<compile_context>
chip_gen: v6e
topology: v6e:2x2x1
jax: 0.10.0
libtpu: 0.0.40
codegen_flags: <defaults>
</compile_context>

<pallas_src>
import functools
import numpy as np
import jax
import jax.numpy as jnp
from jax.experimental import pallas as pl
from jax.experimental.pallas import tpu as pltpu


# ---------------- constants / parameter construction (host-side glue) -------

def _hz_to_mel_htk(f):
    return 2595.0 * np.log10(1.0 + np.asarray(f, dtype=np.float64) / 700.0)


def _mel_to_hz_htk(m):
    return 700.0 * (10.0 ** (np.asarray(m, dtype=np.float64) / 2595.0) - 1.0)


def mel_filterbank(sr, n_fft, n_mels, fmin=0.0, fmax=None):
    """Equivalent of librosa.filters.mel(..., htk=True, norm='slaney')."""
    if fmax is None:
        fmax = float(sr) / 2.0
    n_freq = 1 + n_fft // 2
    fftfreqs = np.linspace(0.0, float(sr) / 2.0, n_freq)
    mel_f = _mel_to_hz_htk(
        np.linspace(_hz_to_mel_htk(fmin), _hz_to_mel_htk(fmax), n_mels + 2))
    fdiff = np.diff(mel_f)
    ramps = mel_f[:, None] - fftfreqs[None, :]
    weights = np.zeros((n_mels, n_freq), dtype=np.float64)
    for i in range(n_mels):
        lower = -ramps[i] / fdiff[i]
        upper = ramps[i + 2] / fdiff[i + 1]
        weights[i] = np.maximum(0.0, np.minimum(lower, upper))
    enorm = 2.0 / (mel_f[2:n_mels + 2] - mel_f[:n_mels])   # slaney norm
    weights *= enorm[:, None]
    return weights.astype(np.float32)


def dft_bases(n_fft, n_bins):
    """One-sided DFT bases (first n_bins): X[k] = sum_n x[n]*(cos - i*sin)(2*pi*k*n/N)."""
    n = np.arange(n_fft, dtype=np.float64)[:, None]
    k = np.arange(n_bins, dtype=np.float64)[None, :]
    ang = 2.0 * np.pi * n * k / n_fft
    return np.cos(ang), np.sin(ang)


def hann_window_periodic(win_length):
    """Matches torch.hann_window(win_length) (periodic=True)."""
    n = np.arange(win_length, dtype=np.float64)
    return 0.5 - 0.5 * np.cos(2.0 * np.pi * n / win_length)


def _round_up(x, m):
    return ((x + m - 1) // m) * m


_VMEM_CAP = None


def _vmem_capacity_bytes():
    """Per-core VMEM capacity (generation-aware); conservative fallback."""
    global _VMEM_CAP
    if _VMEM_CAP is None:
        try:
            _VMEM_CAP = int(pltpu.get_tpu_info().vmem_capacity_bytes)
        except Exception:
            _VMEM_CAP = 64 * 1024 * 1024          # v7x-safe default
    return _VMEM_CAP


# ---------------------------- Pallas kernel ---------------------------------
# grid = (B, ceil(T / tT)).  Per grid step:
#   frames_ref : (tT, n_fft_new)           bf16, windowing folded into the basis
#   basis_ref  : (n_fft_new, 2*n_keep_pad) bf16, [win*cos | win*sin], zero-padded
#   melT_ref   : (n_keep_pad, n_mels_pad)  bf16, mel_basis.T zero-padded (+keyshift scale)
#   out_ref    : (tT, n_mels_pad)          lane-dense log-mel tile
def _logmel_kernel(frames_ref, basis_ref, melT_ref, out_ref, *, n_keep_pad, clamp):
    ri = jnp.dot(frames_ref[...], basis_ref[...],
                 preferred_element_type=jnp.float32)         # (tT, 2*n_keep_pad) f32
    real = ri[:, :n_keep_pad]                                # 128-aligned static slices
    imag = ri[:, n_keep_pad:]
    # sqrt(r^2 + i^2) instead of hypot: fine at audio magnitudes, cheaper on VPU/EUP.
    mag = jnp.sqrt(real * real + imag * imag)                # (tT, n_keep_pad) f32
    mel = jnp.dot(mag.astype(melT_ref.dtype), melT_ref[...],
                  preferred_element_type=jnp.float32)        # (tT, n_mels_pad) f32
    out_ref[...] = jnp.log(jnp.maximum(mel, clamp)).astype(out_ref.dtype)


def _build_forward(*, n_fft_new, hop_length, n_keep_pad, n_mels, n_mels_pad,
                   clamp, center, out_layout, out_dtype, single_buffer):
    """Returns fn(audio, basis, melT): reflect pad -> framing -> kernel -> layout."""
    two_nk = 2 * n_keep_pad
    out_dtype = jnp.dtype(out_dtype)
    out_bytes = out_dtype.itemsize

    def _const_spec(shape):
        if single_buffer:
            # constant index_map -> DMA'd once; single buffer saves VMEM (key on v7x).
            return pl.BlockSpec(shape, lambda b, j: (0, 0),
                                pipeline_mode=pl.Buffered(1))
        return pl.BlockSpec(shape, lambda b, j: (0, 0))

    def fn(audio, basis, melT):
        B, _ = audio.shape
        if center:                                   # torch.stft center=True semantics
            p = n_fft_new // 2
            audio = jnp.pad(audio, ((0, 0), (p, p)), mode="reflect")
        Lp = audio.shape[1]
        T = 1 + (Lp - n_fft_new) // hop_length
        if T <= 0:
            raise ValueError("audio too short for one STFT frame")

        # ---- frame-tile size: largest (<=1024) fitting the VMEM budget ------
        budget = int(0.75 * _vmem_capacity_bytes())
        nbuf = 1 if single_buffer else 2

        def vmem_est(t):
            return (2 * t * n_fft_new * 2                        # frames tile x2, bf16
                    + nbuf * n_fft_new * two_nk * 2              # fused DFT basis
                    + nbuf * n_keep_pad * n_mels_pad * 2         # melT
                    + 2 * t * n_mels_pad * out_bytes             # out tile x2
                    + t * (two_nk + 2 * n_keep_pad + n_mels_pad) * 4)  # f32 temps

        tT = min(1024, T)
        cands = [c for c in (512, 256, 128, 64, 32, 16, 8) if c < T]
        while cands and 2 * vmem_est(tT) > budget:
            tT = cands.pop(0)
        num_t = -(-T // tT)
        T_pad = num_t * tT

        # ---- gather-free framing: shifted contiguous slices + reshape -------
        # frames[t, j*hop + c] = audio[(t + j)*hop + c]  -> one slice+reshape per j.
        k_blocks = -(-n_fft_new // hop_length)
        need = (k_blocks - 1) * hop_length + T_pad * hop_length
        extra = max(0, need - Lp)
        a2 = jnp.pad(audio, ((0, 0), (0, extra))) if extra else audio
        blocks = []
        for j in range(k_blocks):
            w = min(hop_length, n_fft_new - j * hop_length)
            seg = a2[:, j * hop_length:j * hop_length + T_pad * hop_length]
            seg = seg.reshape(B, T_pad, hop_length)
            blocks.append(seg if w == hop_length else seg[:, :, :w])
        frames = jnp.concatenate(blocks, axis=-1).astype(jnp.bfloat16)  # (B,T_pad,n_fft)

        vmem_limit = int(min(max(2 * vmem_est(tT), 32 * 1024 * 1024), budget))

        flops = 2 * B * T_pad * (n_fft_new * two_nk + n_keep_pad * n_mels_pad)
        transcendentals = B * T_pad * (n_keep_pad + n_mels_pad)   # sqrt + log
        bytes_accessed = (B * T_pad * n_fft_new * 2 + n_fft_new * two_nk * 2
                          + n_keep_pad * n_mels_pad * 2
                          + B * T * n_mels_pad * out_bytes)

        kernel = functools.partial(_logmel_kernel, n_keep_pad=n_keep_pad, clamp=clamp)
        out = pl.pallas_call(
            kernel,
            out_shape=jax.ShapeDtypeStruct((B, T, n_mels_pad), out_dtype),
            grid=(B, num_t),
            in_specs=[
                pl.BlockSpec((None, tT, n_fft_new), lambda b, j: (b, j, 0)),
                _const_spec((n_fft_new, two_nk)),
                _const_spec((n_keep_pad, n_mels_pad)),
            ],
            out_specs=pl.BlockSpec((None, tT, n_mels_pad), lambda b, j: (b, j, 0)),
            compiler_params=pltpu.CompilerParams(
                dimension_semantics=("parallel", "parallel"),
                vmem_limit_bytes=vmem_limit),
            cost_estimate=pl.CostEstimate(flops=int(flops),
                                          transcendentals=int(transcendentals),
                                          bytes_accessed=int(bytes_accessed)),
        )(frames, basis, melT)

        out = out[:, :, :n_mels]                     # drop zero-padded mel channels
        if out_layout == "BMT":                      # PyTorch layout (B, n_mels, T)
            out = jnp.transpose(out, (0, 2, 1))
        return out

    return fn


# ------------------------------- module -------------------------------------

class MelSpectrogram:
    """Drop-in forward of the PyTorch MelSpectrogram module (log-mel, HTK filters)."""

    _single_buffer_consts = True   # flipped off once if pl.Buffered(1) is unsupported

    def __init__(self, n_mel_channels, sample_rate, win_length, hop_length,
                 n_fft=None, mel_fmin=0, mel_fmax=None, clamp=1e-5):
        n_fft = win_length if n_fft is None else n_fft
        self.n_fft = n_fft
        self.win_length = win_length
        self.hop_length = hop_length
        self.sample_rate = sample_rate
        self.n_mel_channels = n_mel_channels
        self.clamp = float(clamp)
        # deterministic "buffer" (mirrors register_buffer('mel_basis', ...))
        self.mel_basis = mel_filterbank(sample_rate, n_fft, n_mel_channels,
                                        fmin=mel_fmin, fmax=mel_fmax)
        self._consts_cache = {}   # keyshift -> device constants + geometry
        self._fn_cache = {}       # config key -> jitted forward fn

    # ---- per-keyshift device constants (built once, cached on device) -------
    def _get_consts(self, keyshift):
        key = int(keyshift)
        c = self._consts_cache.get(key)
        if c is not None:
            return c
        factor = 2.0 ** (keyshift / 12.0)
        n_fft_new = int(np.round(self.n_fft * factor))
        win_length_new = int(np.round(self.win_length * factor))

        # periodic hann window, centre-padded to n_fft_new (torch.stft semantics)
        window = hann_window_periodic(win_length_new)
        if win_length_new < n_fft_new:
            lpad = (n_fft_new - win_length_new) // 2
            window = np.pad(window, (lpad, n_fft_new - win_length_new - lpad))

        size = self.n_fft // 2 + 1
        n_freq_new = n_fft_new // 2 + 1
        n_keep = min(size, n_freq_new)
        # Trim trailing freq bins whose mel weights are all zero (always drops the
        # Nyquist bin for fmax <= sr/2): exact, and shrinks the DFT matmul width.
        nz = np.flatnonzero(np.abs(self.mel_basis).max(axis=0) > 0)
        n_keep_eff = max(1, min(n_keep, (int(nz[-1]) + 1) if nz.size else 1))
        n_keep_pad = _round_up(n_keep_eff, 128)      # lane-aligned matmul dims
        n_mels_pad = _round_up(self.n_mel_channels, 128)   # lane-dense output stores
        two_nk = 2 * n_keep_pad

        # Hann window folded into a fused [cos | sin] basis.
        cos_b, sin_b = dft_bases(n_fft_new, n_keep_eff)
        basis = np.zeros((n_fft_new, two_nk), dtype=np.float32)
        basis[:, :n_keep_eff] = window[:, None] * cos_b
        basis[:, n_keep_pad:n_keep_pad + n_keep_eff] = window[:, None] * sin_b

        melT = np.zeros((n_keep_pad, n_mels_pad), dtype=np.float32)
        melT[:n_keep_eff, :self.n_mel_channels] = self.mel_basis[:, :n_keep_eff].T
        if keyshift != 0:
            melT *= self.win_length / win_length_new   # keyshift magnitude rescale

        c = dict(n_fft_new=n_fft_new, n_keep_pad=n_keep_pad, n_mels_pad=n_mels_pad,
                 basis=jnp.asarray(basis, dtype=jnp.bfloat16),
                 melT=jnp.asarray(melT, dtype=jnp.bfloat16))
        self._consts_cache[key] = c
        return c

    def _get_forward(self, consts, hop_length, center, out_layout, out_dtype,
                     single_buffer):
        key = (consts["n_fft_new"], hop_length, center, out_layout,
               jnp.dtype(out_dtype).name, single_buffer)
        fn = self._fn_cache.get(key)
        if fn is None:
            fn = jax.jit(_build_forward(
                n_fft_new=consts["n_fft_new"], hop_length=hop_length,
                n_keep_pad=consts["n_keep_pad"], n_mels=self.n_mel_channels,
                n_mels_pad=consts["n_mels_pad"], clamp=self.clamp, center=center,
                out_layout=out_layout, out_dtype=out_dtype,
                single_buffer=single_buffer))
            self._fn_cache[key] = fn
        return fn

    def __call__(self, audio, keyshift=0, speed=1, center=True,
                 out_layout="BMT", out_dtype=jnp.float32):
        """out_layout: "BMT" (PyTorch (B, n_mels, T), default) or "BTM" (lane-dense)."""
        audio = jnp.asarray(audio, jnp.float32)
        hop_length_new = int(np.round(self.hop_length * speed))
        consts = self._get_consts(keyshift)
        while True:
            sb = MelSpectrogram._single_buffer_consts
            fn = self._get_forward(consts, hop_length_new, bool(center),
                                   out_layout, out_dtype, sb)
            try:
                return fn(audio, consts["basis"], consts["melT"])
            except Exception:
                if sb:
                    # pl.Buffered(1) rejected by this JAX/Mosaic version ->
                    # fall back (once) to default double-buffered constants.
                    MelSpectrogram._single_buffer_consts = False
                    continue
                raise


# ------------------------------ reference -----------------------------------

def reference_logmel(m: MelSpectrogram, audio):
    """Pure-JAX reference (keyshift=0, speed=1, center=True path)."""
    pad = m.n_fft // 2
    ap = jnp.pad(jnp.asarray(audio, jnp.float32), ((0, 0), (pad, pad)), mode="reflect")
    win = jnp.asarray(hann_window_periodic(m.win_length).astype(np.float32))
    T = 1 + (ap.shape[1] - m.n_fft) // m.hop_length
    idx = np.arange(T)[:, None] * m.hop_length + np.arange(m.n_fft)[None, :]
    frames = ap[:, idx] * win
    mag = jnp.abs(jnp.fft.rfft(frames, axis=-1))                     # (B, T, n_freq)
    mel = jnp.einsum("mf,btf->bmt", jnp.asarray(m.mel_basis), mag)   # (B, n_mels, T)
    return jnp.log(jnp.clip(mel, m.clamp))


def _assert_close(out, ref, name):
    out = np.asarray(out, dtype=np.float64)
    ref = np.asarray(ref, dtype=np.float64)
    assert out.shape == ref.shape, (name, out.shape, ref.shape)
    assert np.all(np.isfinite(out)), name
    err = np.abs(out - ref)
    # bf16 frames/basis give ~0.3-1% relative magnitude error; rare
    # near-cancellation bins can amplify in log space, hence quantile bounds.
    assert float(err.mean()) < 2e-2, (name, float(err.mean()))
    assert float(np.quantile(err, 0.999)) < 1.5e-1, (name, float(np.quantile(err, 0.999)))
    assert float(err.max()) < 2.0, (name, float(err.max()))


if __name__ == "__main__":
    key = jax.random.PRNGKey(0)
    m = MelSpectrogram(n_mel_channels=32, sample_rate=16000,
                       win_length=128, hop_length=32)

    # small case: single T tile (T = 17)
    B, L = 2, 512
    audio = jax.random.normal(key, (B, L), dtype=jnp.float32)
    out = jax.block_until_ready(m(audio))                      # (2, 32, 17)
    ref = reference_logmel(m, audio)
    assert out.shape == (B, 32, 17), out.shape
    _assert_close(out, ref, "small")

    # long case: exercises the tiled T grid (tT = 1024, 2 tiles, partial last block)
    audio2 = jax.random.normal(jax.random.PRNGKey(1), (1, 40000), dtype=jnp.float32)
    out2 = jax.block_until_ready(m(audio2))                    # (1, 32, 1251)
    ref2 = reference_logmel(m, audio2)
    assert out2.shape == (1, 32, 1251), out2.shape
    _assert_close(out2, ref2, "long")

    # lane-dense (B, T, n_mels) bf16 output path (skips the final transpose)
    out3 = jax.block_until_ready(m(audio, out_layout="BTM", out_dtype=jnp.bfloat16))
    assert out3.shape == (B, 17, 32), out3.shape
    _assert_close(jnp.transpose(out3.astype(jnp.float32), (0, 2, 1)), ref, "btm_bf16")

    # TODO(synk): keyshift != 0 / speed != 1 paths reuse the same kernel (resize
    # folded into basis trimming / melT rescale) but are not exercised here.
    print("KERNEL_OK")
</pallas_src>

<mosaic_0001>
module attributes {stable_mosaic.version = 11 : i64} {
  func.func @_logmel_kernel(%arg0: i32, %arg1: i32, %arg2: memref<1x17x128xbf16, #tpu.memory_space<vmem>>, %arg3: memref<128x256xbf16, #tpu.memory_space<vmem>>, %arg4: memref<128x128xbf16, #tpu.memory_space<vmem>>, %arg5: memref<1x17x128xf32, #tpu.memory_space<vmem>>) attributes {dimension_semantics = [#tpu.dimension_semantics<parallel>, #tpu.dimension_semantics<parallel>], iteration_bounds = array<i64: 2, 1>, scalar_prefetch = 0 : i64, scratch_operands = 0 : i64, tpu.core_type = #tpu.core_type<tc>, window_params = [{transform_indices = @transform_0, window_bounds = array<i64: 1, 17, 128>}, {pipeline_mode = #tpu.pipeline_mode<synchronous>, transform_indices = @transform_1, window_bounds = array<i64: 128, 256>}, {pipeline_mode = #tpu.pipeline_mode<synchronous>, transform_indices = @transform_2, window_bounds = array<i64: 128, 128>}, {transform_indices = @transform_3, window_bounds = array<i64: 1, 17, 128>}]} {
    %c0 = arith.constant 0 : index
    %c0_0 = arith.constant 0 : index
    %c0_1 = arith.constant 0 : index
    %0 = vector.load %arg2[%c0, %c0_0, %c0_1] : memref<1x17x128xbf16, #tpu.memory_space<vmem>>, vector<1x17x128xbf16>
    %1 = vector.shape_cast %0 : vector<1x17x128xbf16> to vector<17x128xbf16>
    %c0_2 = arith.constant 0 : index
    %c0_3 = arith.constant 0 : index
    %2 = vector.load %arg3[%c0_2, %c0_3] : memref<128x256xbf16, #tpu.memory_space<vmem>>, vector<128x256xbf16>
    %cst = arith.constant dense<0.000000e+00> : vector<17x256xf32>
    %3 = tpu.matmul %1, %2, %cst {dimension_numbers = #tpu.dot_dimension_numbers<[1], [0], [0], [1], [0, 0, 1, 1], [], []>} : vector<17x128xbf16>, vector<128x256xbf16>, vector<17x256xf32> -> vector<17x256xf32>
    %4 = vector.extract_strided_slice %3 {offsets = [0, 0], sizes = [17, 128], strides = [1, 1]} : vector<17x256xf32> to vector<17x128xf32>
    %5 = vector.extract_strided_slice %3 {offsets = [0, 128], sizes = [17, 128], strides = [1, 1]} : vector<17x256xf32> to vector<17x128xf32>
    %6 = arith.mulf %4, %4 : vector<17x128xf32>
    %7 = arith.mulf %5, %5 : vector<17x128xf32>
    %8 = arith.addf %6, %7 : vector<17x128xf32>
    %9 = math.sqrt %8 : vector<17x128xf32>
    %10 = arith.truncf %9 : vector<17x128xf32> to vector<17x128xbf16>
    %c0_4 = arith.constant 0 : index
    %c0_5 = arith.constant 0 : index
    %11 = vector.load %arg4[%c0_4, %c0_5] : memref<128x128xbf16, #tpu.memory_space<vmem>>, vector<128x128xbf16>
    %cst_6 = arith.constant dense<0.000000e+00> : vector<17x128xf32>
    %12 = tpu.matmul %10, %11, %cst_6 {dimension_numbers = #tpu.dot_dimension_numbers<[1], [0], [0], [1], [0, 0, 1, 1], [], []>} : vector<17x128xbf16>, vector<128x128xbf16>, vector<17x128xf32> -> vector<17x128xf32>
    %cst_7 = arith.constant 9.99999974E-6 : f32
    %13 = vector.broadcast %cst_7 : f32 to vector<17x128xf32>
    %14 = arith.maximumf %12, %13 : vector<17x128xf32>
    %15 = math.log %14 : vector<17x128xf32>
    %c0_8 = arith.constant 0 : index
    %c0_9 = arith.constant 0 : index
    %c0_10 = arith.constant 0 : index
    %16 = vector.load %arg5[%c0_8, %c0_9, %c0_10] : memref<1x17x128xf32, #tpu.memory_space<vmem>>, vector<1x17x128xf32>
    %17 = vector.shape_cast %16 : vector<1x17x128xf32> to vector<17x128xf32>
    %18 = vector.shape_cast %15 : vector<17x128xf32> to vector<1x17x128xf32>
    tpu.vector_store %arg5[%c0_8, %c0_9, %c0_10], %18 {strides = array<i32>} : memref<1x17x128xf32, #tpu.memory_space<vmem>>, vector<1x17x128xf32>,
    return
  }
  func.func @transform_0(%arg0: i32, %arg1: i32) -> (i32, i32, i32) {
    %c0_i32 = arith.constant 0 : i32
    %c0_i32_0 = arith.constant 0 : i32
    return %arg0, %arg1, %c0_i32 : i32, i32, i32
  }
  func.func @transform_1(%arg0: i32, %arg1: i32) -> (i32, i32) {
    %c0_i32 = arith.constant 0 : i32
    %c0_i32_0 = arith.constant 0 : i32
    %c0_i32_1 = arith.constant 0 : i32
    return %c0_i32, %c0_i32_0 : i32, i32
  }
  func.func @transform_2(%arg0: i32, %arg1: i32) -> (i32, i32) {
    %c0_i32 = arith.constant 0 : i32
    %c0_i32_0 = arith.constant 0 : i32
    %c0_i32_1 = arith.constant 0 : i32
    return %c0_i32, %c0_i32_0 : i32, i32
  }
  func.func @transform_3(%arg0: i32, %arg1: i32) -> (i32, i32, i32) {
    %c0_i32 = arith.constant 0 : i32
    %c0_i32_0 = arith.constant 0 : i32
    return %arg0, %arg1, %c0_i32 : i32, i32, i32
  }
}

module attributes {stable_mosaic.version = 11 : i64} {
  func.func @_logmel_kernel(%arg0: i32, %arg1: i32, %arg2: memref<1x17x128xbf16, #tpu.memory_space<vmem>>, %arg3: memref<128x256xbf16, #tpu.memory_space<vmem>>, %arg4: memref<128x128xbf16, #tpu.memory_space<vmem>>, %arg5: memref<1x17x128xf32, #tpu.memory_space<vmem>>) attributes {dimension_semantics = [#tpu.dimension_semantics<parallel>, #tpu.dimension_semantics<parallel>], iteration_bounds = array<i64: 2, 1>, scalar_prefetch = 0 : i64, scratch_operands = 0 : i64, tpu.core_type = #tpu.core_type<tc>, window_params = [{transform_indices = @transform_0, window_bounds = array<i64: 1, 17, 128>}, {pipeline_mode = #tpu.pipeline_mode<synchronous>, transform_indices = @transform_1, window_bounds = array<i64: 128, 256>}, {pipeline_mode = #tpu.pipeline_mode<synchronous>, transform_indices = @transform_2, window_bounds = array<i64: 128, 128>}, {transform_indices = @transform_3, window_bounds = array<i64: 1, 17, 128>}]} {
    %c0 = arith.constant 0 : index
    %c0_0 = arith.constant 0 : index
    %c0_1 = arith.constant 0 : index
    %0 = vector.load %arg2[%c0, %c0_0, %c0_1] : memref<1x17x128xbf16, #tpu.memory_space<vmem>>, vector<1x17x128xbf16>
    %1 = vector.shape_cast %0 : vector<1x17x128xbf16> to vector<17x128xbf16>
    %c0_2 = arith.constant 0 : index
    %c0_3 = arith.constant 0 : index
    %2 = vector.load %arg3[%c0_2, %c0_3] : memref<128x256xbf16, #tpu.memory_space<vmem>>, vector<128x256xbf16>
    %cst = arith.constant dense<0.000000e+00> : vector<17x256xf32>
    %3 = tpu.matmul %1, %2, %cst {dimension_numbers = #tpu.dot_dimension_numbers<[1], [0], [0], [1], [0, 0, 1, 1], [], []>} : vector<17x128xbf16>, vector<128x256xbf16>, vector<17x256xf32> -> vector<17x256xf32>
    %4 = vector.extract_strided_slice %3 {offsets = [0, 0], sizes = [17, 128], strides = [1, 1]} : vector<17x256xf32> to vector<17x128xf32>
    %5 = vector.extract_strided_slice %3 {offsets = [0, 128], sizes = [17, 128], strides = [1, 1]} : vector<17x256xf32> to vector<17x128xf32>
    %6 = arith.mulf %4, %4 : vector<17x128xf32>
    %7 = arith.mulf %5, %5 : vector<17x128xf32>
    %8 = arith.addf %6, %7 : vector<17x128xf32>
    %9 = math.sqrt %8 : vector<17x128xf32>
    %10 = arith.truncf %9 : vector<17x128xf32> to vector<17x128xbf16>
    %c0_4 = arith.constant 0 : index
    %c0_5 = arith.constant 0 : index
    %11 = vector.load %arg4[%c0_4, %c0_5] : memref<128x128xbf16, #tpu.memory_space<vmem>>, vector<128x128xbf16>
    %cst_6 = arith.constant dense<0.000000e+00> : vector<17x128xf32>
    %12 = tpu.matmul %10, %11, %cst_6 {dimension_numbers = #tpu.dot_dimension_numbers<[1], [0], [0], [1], [0, 0, 1, 1], [], []>} : vector<17x128xbf16>, vector<128x128xbf16>, vector<17x128xf32> -> vector<17x128xf32>
    %cst_7 = arith.constant 9.99999974E-6 : f32
    %13 = vector.broadcast %cst_7 : f32 to vector<17x128xf32>
    %14 = arith.maximumf %12, %13 : vector<17x128xf32>
    %15 = math.log %14 : vector<17x128xf32>
    %c0_8 = arith.constant 0 : index
    %c0_9 = arith.constant 0 : index
    %c0_10 = arith.constant 0 : index
    %16 = vector.load %arg5[%c0_8, %c0_9, %c0_10] : memref<1x17x128xf32, #tpu.memory_space<vmem>>, vector<1x17x128xf32>
    %17 = vector.shape_cast %16 : vector<1x17x128xf32> to vector<17x128xf32>
    %18 = vector.shape_cast %15 : vector<17x128xf32> to vector<1x17x128xf32>
    tpu.vector_store %arg5[%c0_8, %c0_9, %c0_10], %18 {strides = array<i32>} : memref<1x17x128xf32, #tpu.memory_space<vmem>>, vector<1x17x128xf32>,
    return
  }
  func.func @transform_0(%arg0: i32, %arg1: i32) -> (i32, i32, i32) {
    %c0_i32 = arith.constant 0 : i32
    %c0_i32_0 = arith.constant 0 : i32
    return %arg0, %arg1, %c0_i32 : i32, i32, i32
  }
  func.func @transform_1(%arg0: i32, %arg1: i32) -> (i32, i32) {
    %c0_i32 = arith.constant 0 : i32
    %c0_i32_0 = arith.constant 0 : i32
    %c0_i32_1 = arith.constant 0 : i32
    return %c0_i32, %c0_i32_0 : i32, i32
  }
  func.func @transform_2(%arg0: i32, %arg1: i32) -> (i32, i32) {
    %c0_i32 = arith.constant 0 : i32
    %c0_i32_0 = arith.constant 0 : i32
    %c0_i32_1 = arith.constant 0 : i32
    return %c0_i32, %c0_i32_0 : i32, i32
  }
  func.func @transform_3(%arg0: i32, %arg1: i32) -> (i32, i32, i32) {
    %c0_i32 = arith.constant 0 : i32
    %c0_i32_0 = arith.constant 0 : i32
    return %arg0, %arg1, %c0_i32 : i32, i32, i32
  }
}

</mosaic_0001>

<bundles_post_ra>
// kernel: fn.1
= control target key start
LH: loop header
LB: loop body
LE: loop exit
PB: predicated region body
PF: predicated region fallthrough
CT: control target
= control target key end

     0   :  { %s797_s12 = smov 0   ;;  %s799_s13 = smov 0   ;;  %s906_s0 = inlined_call_operand.vmem [shape: bf16[2,17,128], index: 0, kind: input, shape index: {}]   ;;  %s907_s1 = inlined_call_operand.vmem [shape: bf16[128,256], index: 1, kind: input, shape index: {}]   ;;  %s908_s2 = inlined_call_operand.vmem [shape: bf16[128,128], index: 2, kind: input, shape index: {}]   ;;  %s909_s3 = inlined_call_operand.vmem [shape: f32[2,17,128], index: 3, kind: output, shape index: {}]  }
   0x1   :  { %s801_s14 = smov 0  }
   0x2 LB: > { %s25_s15 = sadd.s32 1, %s770_s13  ;;  %p618_p0 = scmp.ge.s32.totalorder %s774_s14, 1  ;;  %s774_s14 = sphi %s801_s14, %s13_s14   ;;  %s770_s13 = sphi %s799_s13, %s911_s13   ;;  %s766_s12 = sphi %s797_s12, %s910_s12  }
   0x3   : > { %p27_p1 = scmp.ge.s32.totalorder %s25_s15, 2  ;;  %p158_p2 = scmp.lt.s32.totalorder %s774_s14, 3 }
   0x5   : > { %s913_s15 = smov (%p27_p1, %s25_s15), 0  ;;  %p159_p3 = pnand %p618_p0, %p158_p2 }
   0x6   : > { %p191_p4 = scmp.lt.s32.totalorder (!%p159_p3), %s766_s12, 1 }
   0x7   : > { %162 = sbr.rel (%p159_p3) target bundleno = 490 (0x1ea), region = 32 }
   0xc   : > { %v706_v0 = vld [vmem:[%s907_s1 + $0x74] ss:$8 sps:$4 sm:$0xff]   ;;  %v708_v1 = vld [vmem:[%s907_s1 + $0x70] ss:$8 sps:$4 sm:$0xff]   ;;  %v776_v2 = vmov 0   ;;  %s915_s12 = smov (!%p191_p4, %s766_s12), 1 }
   0xd   : > { %352 = vmatprep.mubr.bf16.mxu0 %v776_v2  ;;  %320 = vmatprep.subr.bf16.mxu0 %v706_v0  ;;  %v709_v3 = vld [vmem:[%s907_s1 + $0x64] ss:$8 sps:$4 sm:$0xff]   ;;  %v711_v4 = vld [vmem:[%s907_s1 + $0x60] ss:$8 sps:$4 sm:$0xff]   ;;  %v712_v5 = vld [vmem:[%s907_s1 + $0x54] ss:$8 sps:$4 sm:$0xff]  }
   0xe   : > { %321 = vmatpush1.bf16.msra.mxu0 %v708_v1  ;;  %s679_s26 = smul.u32 12, %s915_s12  ;;  %v714_v6 = vld [vmem:[%s907_s1 + $0x50] ss:$8 sps:$4 sm:$0xff]   ;;  %v715_v7 = vld [vmem:[%s907_s1 + $0x44] ss:$8 sps:$4 sm:$0xff]  }
   0xf   : > { %322 = vmatprep.subr.bf16.mxu0 %v709_v3  ;;  %v717_v8 = vld [vmem:[%s907_s1 + $0x40] ss:$8 sps:$4 sm:$0xff]   ;;  %v718_v9 = vld [vmem:[%s907_s1 + $0x34] ss:$8 sps:$4 sm:$0xff]   ;;  %v720_v10 = vld [vmem:[%s907_s1 + $0x30] ss:$8 sps:$4 sm:$0xff]  }
  0x10   : > { %s198_s6 = scalar_lea.vmem %s906_s0, %s679_s26  ;;  %v721_v11 = vld [vmem:[%s907_s1 + $0x24] ss:$8 sps:$4 sm:$0xff]   ;;  %v723_v12 = vld [vmem:[%s907_s1 + $0x20] ss:$8 sps:$4 sm:$0xff]   ;;  %v724_v13 = vld [vmem:[%s907_s1 + $0x14] ss:$8 sps:$4 sm:$0xff]  }
  0x11   : > { %v726_v14 = vld [vmem:[%s907_s1 + $0x10] ss:$8 sps:$4 sm:$0xff]   ;;  %v727_v15 = vld [vmem:[%s907_s1 + $0x4] ss:$8 sps:$4 sm:$0xff]   ;;  %v729_v16 = vld [vmem:[%s907_s1] ss:$8 sps:$4 sm:$0xff]  }
  0x12   : > { %323 = vmatpush1.bf16.msra.mxu0 %v711_v4  ;;  %v730_v17 = vld [vmem:[%s198_s6] sm:$0xff]   ;;  %v731_v18 = vld [vmem:[%s198_s6 + $0x8] ss:$0 sps:$4 sm:$0x11]   ;;  %v732_v19 = vld [vmem:[%s908_s2 + $0x38] sm:$0xff]   ;;  %s680_s22 = smul.u32 24, %s915_s12 }
  0x13   : > { %324 = vmatprep.subr.bf16.mxu0 %v712_v5  ;;  %659 = vmatprep.subr.bf16.mxu1 %v732_v19  ;;  %v733_v20 = vld [vmem:[%s908_s2 + $0x30] sm:$0xff]   ;;  %v734_v21 = vld [vmem:[%s908_s2 + $0x28] sm:$0xff]   ;;  %v735_v22 = vld [vmem:[%s908_s2 + $0x20] sm:$0xff]  }
  0x14   : > { %660 = vmatpush3.bf16.msra.mxu1 %v732_v19  ;;  %v736_v23 = vld [vmem:[%s908_s2 + $0x18] sm:$0xff]   ;;  %v737_v24 = vld [vmem:[%s908_s2 + $0x10] sm:$0xff]   ;;  %v738_v25 = vld [vmem:[%s908_s2 + $0x8] sm:$0xff]   ;;  %s208_s25 = scalar_lea.vmem %s909_s3, %s680_s22 }
  0x15   : > { %661 = vmatprep.subr.bf16.mxu1 %v733_v20  ;;  %v739_v26 = vld [vmem:[%s908_s2] sm:$0xff]  }
  0x16   : > { %325 = vmatpush1.bf16.msra.mxu0 %v714_v6 }
  0x17   : > { %326 = vmatprep.subr.bf16.mxu0 %v715_v7 }
  0x18   : > { %662 = vmatpush3.bf16.msra.mxu1 %v733_v20 }
  0x19   : > { %663 = vmatprep.subr.bf16.mxu1 %v734_v21 }
  0x1a   : > { %327 = vmatpush1.bf16.msra.mxu0 %v717_v8 }
  0x1b   : > { %328 = vmatprep.subr.bf16.mxu0 %v718_v9 }
  0x1c   : > { %664 = vmatpush3.bf16.msra.mxu1 %v734_v21 }
  0x1d   : > { %665 = vmatprep.subr.bf16.mxu1 %v735_v22 }
  0x1e   : > { %329 = vmatpush1.bf16.msra.mxu0 %v720_v10 }
  0x1f   : > { %330 = vmatprep.subr.bf16.mxu0 %v721_v11 }
  0x20   : > { %666 = vmatpush3.bf16.msra.mxu1 %v735_v22 }
  0x21   : > { %667 = vmatprep.subr.bf16.mxu1 %v736_v23 }
  0x22   : > { %331 = vmatpush1.bf16.msra.mxu0 %v723_v12 }
  0x23   : > { %332 = vmatprep.subr.bf16.mxu0 %v724_v13 }
  0x24   : > { %668 = vmatpush3.bf16.msra.mxu1 %v736_v23 }
  0x25   : > { %669 = vmatprep.subr.bf16.mxu1 %v737_v24 }
  0x26   : > { %333 = vmatpush1.bf16.msra.mxu0 %v726_v14 }
  0x27   : > { %334 = vmatprep.subr.bf16.mxu0 %v727_v15 }
  0x28   : > { %670 = vmatpush3.bf16.msra.mxu1 %v737_v24 }
  0x29   : > { %671 = vmatprep.subr.bf16.mxu1 %v738_v25 }
  0x2a   : > { %335 = vmatpush1.bf16.msra.mxu0 %v729_v16 }
  0x2c   : > { %672 = vmatpush3.bf16.msra.mxu1 %v738_v25 }
  0x2d   : > { %353 = vmatmul.mubr.bf16.vlgmr.msra.gmra.mxu0 %v730_v17  ;;  %673 = vmatprep.subr.bf16.mxu1 %v739_v26 }
  0x2e   : > { %362 = vmatprep.mubr.bf16.mxu0 %v776_v2 }
  0x30   : > { %674 = vmatpush3.bf16.msra.mxu1 %v739_v26 }
  0x35   : > { %363 = vmatmul.mubr.bf16.gmra.mxu0 %v731_v18 }
  0xed   : > { %v354_v27 = vpop.f32.mrf.mxu0 }
  0xee   : > { %v371_v29 = vmul.f32 %v354_v27, %v354_v27 }
  0xef   : > { %v356_v28 = vpop.f32.mrf.mxu0 }
  0xf0   : > { %v374_v30 = vmul.f32 %v356_v28, %v356_v28 }
  0xf1   : > { %v358_v31 = vpop.f32.mrf.mxu0 }
  0xf2   : > { %v377_v32 = vadd.f32 %v374_v30, %v371_v29  ;;  %v372_v34 = vmul.f32 %v358_v31, %v358_v31 }
  0xf3   : > { %v360_v33 = vpop.f32.mrf.mxu0 }
  0xf4   : > { %740 = vrsqrt.f32 %v377_v32  ;;  %v375_v35 = vmul.f32 %v360_v33, %v360_v33  ;;  %vm382_vm0 = vcmp.eq.f32.partialorder %v377_v32, inf  ;;  %v385_v49 = vand.u32 2147483648, %v377_v32 }
  0xf5   : > { %v364_v36 = vpop.f32.mrf.mxu0  ;;  %vm384_vm2 = vcmp.eq.f32.partialorder %v377_v32, 0.0 }
  0xf6   : > { %v378_v37 = vadd.f32 %v375_v35, %v372_v34  ;;  %v373_v39 = vmul.f32 %v364_v36, %v364_v36 }
  0xf7   : > { %v366_v38 = vpop.f32.mrf.mxu0 }
  0xf8   : > { %742 = vrsqrt.f32 %v378_v37  ;;  %v376_v40 = vmul.f32 %v366_v38, %v366_v38  ;;  %vm389_vm1 = vcmp.eq.f32.partialorder %v378_v37, inf  ;;  %v392_v50 = vand.u32 2147483648, %v378_v37 }
  0xf9   : > { %v368_v41 = vpop.f32.mrf.mxu0  ;;  %vm391_vm3 = vcmp.eq.f32.partialorder %v378_v37, 0.0 }
  0xfa   : > { %v379_v42 = vadd.f32 %v376_v40, %v373_v39 }
  0xfb   : > { %v369_v43 = vpop.f32.mrf.mxu0 }
  0xfc   : > { %744 = vrsqrt.f32 %v379_v42  ;;  %vm396_vm4 = vcmp.eq.f32.partialorder %v379_v42, inf  ;;  %v399_v57 = vand.u32 2147483648, %v379_v42  ;;  %vm398_vm5 = vcmp.eq.f32.partialorder %v379_v42, 0.0 }
 0x101   : > { %v741_v44 = vpop.eup %740 }
 0x102   : > { %v381_v45 = vmul.f32 %v741_v44, %v377_v32 }
 0x104   : > { %v383_v47 = vsel %vm382_vm0, %v377_v32, %v381_v45 }
 0x105   : > { %v743_v46 = vpop.eup %742  ;;  %v386_v53 = vsel %vm384_vm2, %v385_v49, %v383_v47 }
 0x106   : > { %v388_v48 = vmul.f32 %v743_v46, %v378_v37 }
 0x108   : > { %v390_v51 = vsel %vm389_vm1, %v378_v37, %v388_v48 }
 0x109   : > { %v745_v52 = vpop.eup %744  ;;  %v393_v54 = vsel %vm391_vm3, %v392_v50, %v390_v51 }
 0x10a   : > { %v401_v55 = vpack.c.bf16 %v393_v54, %v386_v53  ;;  %v395_v56 = vmul.f32 %v745_v52, %v379_v42 }
 0x10c   : > { %675 = vmatprep.mubr.bf16.mxu1 %v401_v55  ;;  %v397_v58 = vsel %vm396_vm4, %v379_v42, %v395_v56 }
 0x10d   : > { %v400_v59 = vsel %vm398_vm5, %v399_v57, %v397_v58 }
 0x10e   : > { %v402_v60 = vpack.c.bf16 %v400_v59, %v400_v59 }
 0x110   : > { %676 = vmatmul.mubr.bf16.vlgmr.msra.gmra.mxu1 %v402_v60 }
 0x1d0   : > { %v677_v61 = vpop.f32.mrf.mxu1 }
 0x1d1   : > { %v517_v62 = vmax.f32 %v677_v61, 1e-05 }
 0x1d2   : > { %v501_v63 = vpop.f32.mrf.mxu1 }
 0x1d3   : > { %746 = vlog2.f32 %v517_v62  ;;  %v515_v0 = vmax.f32 %v501_v63, 1e-05 }
 0x1d4   : > { %v678_v1 = vpop.f32.mrf.mxu1 }
 0x1d5   : > { %748 = vlog2.f32 %v515_v0 }
 0x1d6   : > { %v504_v2 = vpop.f32.mrf.mxu1 }
 0x1d7   : > { %v516_v3 = vmax.f32 %v504_v2, 1e-05 }
 0x1d9   : > { %750 = vlog2.f32 %v516_v3 }
 0x1e0   : > { %v747_v4 = vpop.eup %746 }
 0x1e1   : > { %v523_v5 = vmul.f32 0.6931472, %v747_v4 }
 0x1e2   : > { %v749_v6 = vpop.eup %748 }
 0x1e3   : > { %526 = vst [vmem:[%s208_s25 + $0x10] sm:$0x1] %v523_v5  ;;  %v519_v7 = vmul.f32 0.6931472, %v749_v6 }
 0x1e5   : > { %524 = vst [vmem:[%s208_s25] sm:$0xff] %v519_v7 }
 0x1e6   : > { %v751_v8 = vpop.eup %750 }
 0x1e7   : > { %v521_v9 = vmul.f32 0.6931472, %v751_v8 }
 0x1e9   : > { %525 = vst [vmem:[%s208_s25 + $0x8] sm:$0xff] %v521_v9 }
 0x1ea PF: > { %s13_s14 = sadd.s32 1, %s774_s14   ;;  %s910_s12 = smov %s770_s13 }
 0x1eb   : > { %p10_p5 = scmp.ge.s32.totalorder %s13_s14, 4   ;;  %s911_s13 = smov %s913_s15 }
 0x1ed   :  { %12 = sbr.rel (!%p10_p5) target bundleno = 2 (0x2), region = 62 }

// kernel: fn.1
= control target key start
LH: loop header
LB: loop body
LE: loop exit
PB: predicated region body
PF: predicated region fallthrough
CT: control target
= control target key end

     0   :  { %s797_s12 = smov 0   ;;  %s799_s13 = smov 0   ;;  %s906_s0 = inlined_call_operand.vmem [shape: bf16[2,17,128], index: 0, kind: input, shape index: {}]   ;;  %s907_s1 = inlined_call_operand.vmem [shape: bf16[128,256], index: 1, kind: input, shape index: {}]   ;;  %s908_s2 = inlined_call_operand.vmem [shape: bf16[128,128], index: 2, kind: input, shape index: {}]   ;;  %s909_s3 = inlined_call_operand.vmem [shape: f32[2,17,128], index: 3, kind: output, shape index: {}]  }
   0x1   :  { %s801_s14 = smov 0  }
   0x2 LB: > { %s25_s15 = sadd.s32 1, %s770_s13  ;;  %p618_p0 = scmp.ge.s32.totalorder %s774_s14, 1  ;;  %s774_s14 = sphi %s801_s14, %s13_s14   ;;  %s770_s13 = sphi %s799_s13, %s911_s13   ;;  %s766_s12 = sphi %s797_s12, %s910_s12  }
   0x3   : > { %p27_p1 = scmp.ge.s32.totalorder %s25_s15, 2  ;;  %p158_p2 = scmp.lt.s32.totalorder %s774_s14, 3 }
   0x5   : > { %s913_s15 = smov (%p27_p1, %s25_s15), 0  ;;  %p159_p3 = pnand %p618_p0, %p158_p2 }
   0x6   : > { %p191_p4 = scmp.lt.s32.totalorder (!%p159_p3), %s766_s12, 1 }
   0x7   : > { %162 = sbr.rel (%p159_p3) target bundleno = 490 (0x1ea), region = 32 }
   0xc   : > { %v706_v0 = vld [vmem:[%s907_s1 + $0x74] ss:$8 sps:$4 sm:$0xff]   ;;  %v708_v1 = vld [vmem:[%s907_s1 + $0x70] ss:$8 sps:$4 sm:$0xff]   ;;  %v776_v2 = vmov 0   ;;  %s915_s12 = smov (!%p191_p4, %s766_s12), 1 }
   0xd   : > { %352 = vmatprep.mubr.bf16.mxu0 %v776_v2  ;;  %320 = vmatprep.subr.bf16.mxu0 %v706_v0  ;;  %v709_v3 = vld [vmem:[%s907_s1 + $0x64] ss:$8 sps:$4 sm:$0xff]   ;;  %v711_v4 = vld [vmem:[%s907_s1 + $0x60] ss:$8 sps:$4 sm:$0xff]   ;;  %v712_v5 = vld [vmem:[%s907_s1 + $0x54] ss:$8 sps:$4 sm:$0xff]  }
   0xe   : > { %321 = vmatpush1.bf16.msra.mxu0 %v708_v1  ;;  %s679_s26 = smul.u32 12, %s915_s12  ;;  %v714_v6 = vld [vmem:[%s907_s1 + $0x50] ss:$8 sps:$4 sm:$0xff]   ;;  %v715_v7 = vld [vmem:[%s907_s1 + $0x44] ss:$8 sps:$4 sm:$0xff]  }
   0xf   : > { %322 = vmatprep.subr.bf16.mxu0 %v709_v3  ;;  %v717_v8 = vld [vmem:[%s907_s1 + $0x40] ss:$8 sps:$4 sm:$0xff]   ;;  %v718_v9 = vld [vmem:[%s907_s1 + $0x34] ss:$8 sps:$4 sm:$0xff]   ;;  %v720_v10 = vld [vmem:[%s907_s1 + $0x30] ss:$8 sps:$4 sm:$0xff]  }
  0x10   : > { %s198_s6 = scalar_lea.vmem %s906_s0, %s679_s26  ;;  %v721_v11 = vld [vmem:[%s907_s1 + $0x24] ss:$8 sps:$4 sm:$0xff]   ;;  %v723_v12 = vld [vmem:[%s907_s1 + $0x20] ss:$8 sps:$4 sm:$0xff]   ;;  %v724_v13 = vld [vmem:[%s907_s1 + $0x14] ss:$8 sps:$4 sm:$0xff]  }
  0x11   : > { %v726_v14 = vld [vmem:[%s907_s1 + $0x10] ss:$8 sps:$4 sm:$0xff]   ;;  %v727_v15 = vld [vmem:[%s907_s1 + $0x4] ss:$8 sps:$4 sm:$0xff]   ;;  %v729_v16 = vld [vmem:[%s907_s1] ss:$8 sps:$4 sm:$0xff]  }
  0x12   : > { %323 = vmatpush1.bf16.msra.mxu0 %v711_v4  ;;  %v730_v17 = vld [vmem:[%s198_s6] sm:$0xff]   ;;  %v731_v18 = vld [vmem:[%s198_s6 + $0x8] ss:$0 sps:$4 sm:$0x11]   ;;  %v732_v19 = vld [vmem:[%s908_s2 + $0x38] sm:$0xff]   ;;  %s680_s22 = smul.u32 24, %s915_s12 }
  0x13   : > { %324 = vmatprep.subr.bf16.mxu0 %v712_v5  ;;  %659 = vmatprep.subr.bf16.mxu1 %v732_v19  ;;  %v733_v20 = vld [vmem:[%s908_s2 + $0x30] sm:$0xff]   ;;  %v734_v21 = vld [vmem:[%s908_s2 + $0x28] sm:$0xff]   ;;  %v735_v22 = vld [vmem:[%s908_s2 + $0x20] sm:$0xff]  }
  0x14   : > { %660 = vmatpush3.bf16.msra.mxu1 %v732_v19  ;;  %v736_v23 = vld [vmem:[%s908_s2 + $0x18] sm:$0xff]   ;;  %v737_v24 = vld [vmem:[%s908_s2 + $0x10] sm:$0xff]   ;;  %v738_v25 = vld [vmem:[%s908_s2 + $0x8] sm:$0xff]   ;;  %s208_s25 = scalar_lea.vmem %s909_s3, %s680_s22 }
  0x15   : > { %661 = vmatprep.subr.bf16.mxu1 %v733_v20  ;;  %v739_v26 = vld [vmem:[%s908_s2] sm:$0xff]  }
  0x16   : > { %325 = vmatpush1.bf16.msra.mxu0 %v714_v6 }
  0x17   : > { %326 = vmatprep.subr.bf16.mxu0 %v715_v7 }
  0x18   : > { %662 = vmatpush3.bf16.msra.mxu1 %v733_v20 }
  0x19   : > { %663 = vmatprep.subr.bf16.mxu1 %v734_v21 }
  0x1a   : > { %327 = vmatpush1.bf16.msra.mxu0 %v717_v8 }
  0x1b   : > { %328 = vmatprep.subr.bf16.mxu0 %v718_v9 }
  0x1c   : > { %664 = vmatpush3.bf16.msra.mxu1 %v734_v21 }
  0x1d   : > { %665 = vmatprep.subr.bf16.mxu1 %v735_v22 }
  0x1e   : > { %329 = vmatpush1.bf16.msra.mxu0 %v720_v10 }
  0x1f   : > { %330 = vmatprep.subr.bf16.mxu0 %v721_v11 }
  0x20   : > { %666 = vmatpush3.bf16.msra.mxu1 %v735_v22 }
  0x21   : > { %667 = vmatprep.subr.bf16.mxu1 %v736_v23 }
  0x22   : > { %331 = vmatpush1.bf16.msra.mxu0 %v723_v12 }
  0x23   : > { %332 = vmatprep.subr.bf16.mxu0 %v724_v13 }
  0x24   : > { %668 = vmatpush3.bf16.msra.mxu1 %v736_v23 }
  0x25   : > { %669 = vmatprep.subr.bf16.mxu1 %v737_v24 }
  0x26   : > { %333 = vmatpush1.bf16.msra.mxu0 %v726_v14 }
  0x27   : > { %334 = vmatprep.subr.bf16.mxu0 %v727_v15 }
  0x28   : > { %670 = vmatpush3.bf16.msra.mxu1 %v737_v24 }
  0x29   : > { %671 = vmatprep.subr.bf16.mxu1 %v738_v25 }
  0x2a   : > { %335 = vmatpush1.bf16.msra.mxu0 %v729_v16 }
  0x2c   : > { %672 = vmatpush3.bf16.msra.mxu1 %v738_v25 }
  0x2d   : > { %353 = vmatmul.mubr.bf16.vlgmr.msra.gmra.mxu0 %v730_v17  ;;  %673 = vmatprep.subr.bf16.mxu1 %v739_v26 }
  0x2e   : > { %362 = vmatprep.mubr.bf16.mxu0 %v776_v2 }
  0x30   : > { %674 = vmatpush3.bf16.msra.mxu1 %v739_v26 }
  0x35   : > { %363 = vmatmul.mubr.bf16.gmra.mxu0 %v731_v18 }
  0xed   : > { %v354_v27 = vpop.f32.mrf.mxu0 }
  0xee   : > { %v371_v29 = vmul.f32 %v354_v27, %v354_v27 }
  0xef   : > { %v356_v28 = vpop.f32.mrf.mxu0 }
  0xf0   : > { %v374_v30 = vmul.f32 %v356_v28, %v356_v28 }
  0xf1   : > { %v358_v31 = vpop.f32.mrf.mxu0 }
  0xf2   : > { %v377_v32 = vadd.f32 %v374_v30, %v371_v29  ;;  %v372_v34 = vmul.f32 %v358_v31, %v358_v31 }
  0xf3   : > { %v360_v33 = vpop.f32.mrf.mxu0 }
  0xf4   : > { %740 = vrsqrt.f32 %v377_v32  ;;  %v375_v35 = vmul.f32 %v360_v33, %v360_v33  ;;  %vm382_vm0 = vcmp.eq.f32.partialorder %v377_v32, inf  ;;  %v385_v49 = vand.u32 2147483648, %v377_v32 }
  0xf5   : > { %v364_v36 = vpop.f32.mrf.mxu0  ;;  %vm384_vm2 = vcmp.eq.f32.partialorder %v377_v32, 0.0 }
  0xf6   : > { %v378_v37 = vadd.f32 %v375_v35, %v372_v34  ;;  %v373_v39 = vmul.f32 %v364_v36, %v364_v36 }
  0xf7   : > { %v366_v38 = vpop.f32.mrf.mxu0 }
  0xf8   : > { %742 = vrsqrt.f32 %v378_v37  ;;  %v376_v40 = vmul.f32 %v366_v38, %v366_v38  ;;  %vm389_vm1 = vcmp.eq.f32.partialorder %v378_v37, inf  ;;  %v392_v50 = vand.u32 2147483648, %v378_v37 }
  0xf9   : > { %v368_v41 = vpop.f32.mrf.mxu0  ;;  %vm391_vm3 = vcmp.eq.f32.partialorder %v378_v37, 0.0 }
  0xfa   : > { %v379_v42 = vadd.f32 %v376_v40, %v373_v39 }
  0xfb   : > { %v369_v43 = vpop.f32.mrf.mxu0 }
  0xfc   : > { %744 = vrsqrt.f32 %v379_v42  ;;  %vm396_vm4 = vcmp.eq.f32.partialorder %v379_v42, inf  ;;  %v399_v57 = vand.u32 2147483648, %v379_v42  ;;  %vm398_vm5 = vcmp.eq.f32.partialorder %v379_v42, 0.0 }
 0x101   : > { %v741_v44 = vpop.eup %740 }
 0x102   : > { %v381_v45 = vmul.f32 %v741_v44, %v377_v32 }
 0x104   : > { %v383_v47 = vsel %vm382_vm0, %v377_v32, %v381_v45 }
 0x105   : > { %v743_v46 = vpop.eup %742  ;;  %v386_v53 = vsel %vm384_vm2, %v385_v49, %v383_v47 }
 0x106   : > { %v388_v48 = vmul.f32 %v743_v46, %v378_v37 }
 0x108   : > { %v390_v51 = vsel %vm389_vm1, %v378_v37, %v388_v48 }
 0x109   : > { %v745_v52 = vpop.eup %744  ;;  %v393_v54 = vsel %vm391_vm3, %v392_v50, %v390_v51 }
 0x10a   : > { %v401_v55 = vpack.c.bf16 %v393_v54, %v386_v53  ;;  %v395_v56 = vmul.f32 %v745_v52, %v379_v42 }
 0x10c   : > { %675 = vmatprep.mubr.bf16.mxu1 %v401_v55  ;;  %v397_v58 = vsel %vm396_vm4, %v379_v42, %v395_v56 }
 0x10d   : > { %v400_v59 = vsel %vm398_vm5, %v399_v57, %v397_v58 }
 0x10e   : > { %v402_v60 = vpack.c.bf16 %v400_v59, %v400_v59 }
 0x110   : > { %676 = vmatmul.mubr.bf16.vlgmr.msra.gmra.mxu1 %v402_v60 }
 0x1d0   : > { %v677_v61 = vpop.f32.mrf.mxu1 }
 0x1d1   : > { %v517_v62 = vmax.f32 %v677_v61, 1e-05 }
 0x1d2   : > { %v501_v63 = vpop.f32.mrf.mxu1 }
 0x1d3   : > { %746 = vlog2.f32 %v517_v62  ;;  %v515_v0 = vmax.f32 %v501_v63, 1e-05 }
 0x1d4   : > { %v678_v1 = vpop.f32.mrf.mxu1 }
 0x1d5   : > { %748 = vlog2.f32 %v515_v0 }
 0x1d6   : > { %v504_v2 = vpop.f32.mrf.mxu1 }
 0x1d7   : > { %v516_v3 = vmax.f32 %v504_v2, 1e-05 }
 0x1d9   : > { %750 = vlog2.f32 %v516_v3 }
 0x1e0   : > { %v747_v4 = vpop.eup %746 }
 0x1e1   : > { %v523_v5 = vmul.f32 0.6931472, %v747_v4 }
 0x1e2   : > { %v749_v6 = vpop.eup %748 }
 0x1e3   : > { %526 = vst [vmem:[%s208_s25 + $0x10] sm:$0x1] %v523_v5  ;;  %v519_v7 = vmul.f32 0.6931472, %v749_v6 }
 0x1e5   : > { %524 = vst [vmem:[%s208_s25] sm:$0xff] %v519_v7 }
 0x1e6   : > { %v751_v8 = vpop.eup %750 }
 0x1e7   : > { %v521_v9 = vmul.f32 0.6931472, %v751_v8 }
 0x1e9   : > { %525 = vst [vmem:[%s208_s25 + $0x8] sm:$0xff] %v521_v9 }
 0x1ea PF: > { %s13_s14 = sadd.s32 1, %s774_s14   ;;  %s910_s12 = smov %s770_s13 }
 0x1eb   : > { %p10_p5 = scmp.ge.s32.totalorder %s13_s14, 4   ;;  %s911_s13 = smov %s913_s15 }
 0x1ed   :  { %12 = sbr.rel (!%p10_p5) target bundleno = 2 (0x2), region = 62 }

</bundles_post_ra>
